<compile_context>
chip_gen: v5e
topology: v5e:2x2
jax: 0.10.0
libtpu: 0.0.40
codegen_flags: <defaults>
</compile_context>

<pallas_src>
import functools
import math

import jax
import jax.numpy as jnp
from jax.experimental import pallas as pl
from jax.experimental.pallas import tpu as pltpu

REC_COEFF = 0.0005          # args.rec_coeff (standard capsule-net value)
NO_RECONSTRUCTION = False   # args.no_reconstruction

_LANES = 128
_MAX_BLOCK_ROWS = 2048      # (2048, 128) f32 block = 1 MiB per input per buffer


def _capsule_loss_kernel(labels_ref, classes_ref, img_ref, rec_ref, out_ref,
                         *, rec_scale, inv_batch):
    # Reconstruction partial: per-lane sum of (rec - img)^2 over this tile's rows,
    # pre-scaled by rec_coeff / batch. Cast to f32 *inside* the kernel.
    diff = rec_ref[...].astype(jnp.float32) - img_ref[...].astype(jnp.float32)
    out_ref[0] = jnp.sum(diff * diff, axis=0, keepdims=True) * rec_scale

    # Margin loss is tiny ((B, num_classes)); fold it into tile 0's partial only.
    @pl.when(pl.program_id(0) == 0)
    def _():
        classes = classes_ref[...].astype(jnp.float32)
        labels = labels_ref[...].astype(jnp.float32)
        left = jnp.maximum(0.9 - classes, 0.0) ** 2
        right = jnp.maximum(classes - 0.1, 0.0) ** 2
        margin = jnp.sum(labels * left + 0.5 * (1.0 - labels) * right)
        lane = jax.lax.broadcasted_iota(jnp.int32, (1, _LANES), 1)
        out_ref[0] = out_ref[0] + jnp.where(lane == 0, margin * inv_batch, 0.0)


def capsule_loss(images, labels, classes, reconstructions):
    """images / reconstructions: same total element count (e.g. (B, C, H, W));
    labels / classes: (B, num_classes)."""
    b = images.shape[0]
    n = math.prod(images.shape)
    assert math.prod(reconstructions.shape) == n, (
        "reconstructions and images must have the same number of elements")

    img_flat = images.reshape(-1)
    rec_flat = reconstructions.reshape(-1)

    rows = pl.cdiv(n, _LANES)
    if rows <= _MAX_BLOCK_ROWS:
        block_rows = rows                     # single tile == full dims, always legal
        rows_padded = rows
    else:
        block_rows = _MAX_BLOCK_ROWS          # multiple of 8
        rows_padded = pl.cdiv(rows, block_rows) * block_rows
    num_tiles = rows_padded // block_rows
    padded_n = rows_padded * _LANES

    if padded_n != n:
        # Pad both identically with zeros -> padded region adds 0 to the loss.
        img_flat = jnp.pad(img_flat, (0, padded_n - n))
        rec_flat = jnp.pad(rec_flat, (0, padded_n - n))

    img2d = img_flat.reshape(rows_padded, _LANES)
    rec2d = rec_flat.reshape(rows_padded, _LANES)

    rec_scale = 0.0 if NO_RECONSTRUCTION else REC_COEFF / float(b)
    kernel = functools.partial(
        _capsule_loss_kernel, rec_scale=rec_scale, inv_batch=1.0 / float(b))

    bytes_accessed = (img2d.size * img2d.dtype.itemsize
                      + rec2d.size * rec2d.dtype.itemsize
                      + labels.size * labels.dtype.itemsize
                      + classes.size * classes.dtype.itemsize
                      + num_tiles * _LANES * 4)
    cost = pl.CostEstimate(flops=3 * padded_n + 6 * int(labels.size),
                           transcendentals=0,
                           bytes_accessed=bytes_accessed)

    partials = pl.pallas_call(
        kernel,
        out_shape=jax.ShapeDtypeStruct((num_tiles, 1, _LANES), jnp.float32),
        grid=(num_tiles,),
        in_specs=[
            pl.BlockSpec(labels.shape, lambda i: (0,) * labels.ndim),    # resident
            pl.BlockSpec(classes.shape, lambda i: (0,) * classes.ndim),  # resident
            pl.BlockSpec((block_rows, _LANES), lambda i: (i, 0)),
            pl.BlockSpec((block_rows, _LANES), lambda i: (i, 0)),
        ],
        out_specs=pl.BlockSpec((1, 1, _LANES), lambda i: (i, 0, 0)),
        compiler_params=pltpu.CompilerParams(
            dimension_semantics=("parallel",)),
        cost_estimate=cost,
    )(labels, classes, img2d, rec2d)

    # Final reduction of a handful of lane-dense partials (already /B, *rec_coeff).
    return jnp.sum(partials)


def _reference_loss(images, labels, classes, reconstructions):
    left = jnp.maximum(0.9 - classes, 0.0) ** 2
    right = jnp.maximum(classes - 0.1, 0.0) ** 2
    margin = jnp.sum(labels * left + 0.5 * (1.0 - labels) * right)
    loss = margin
    if not NO_RECONSTRUCTION:
        rec = jnp.sum((reconstructions.astype(jnp.float32).reshape(-1)
                       - images.astype(jnp.float32).reshape(-1)) ** 2)
        loss = loss + REC_COEFF * rec
    return loss / images.shape[0]


if __name__ == "__main__":
    key = jax.random.PRNGKey(0)
    k_img, k_cls, k_lbl, k_rec = jax.random.split(key, 4)

    B, C, H, W = 2, 4, 16, 16
    NUM_CLASSES = 10

    images = jax.random.uniform(k_img, (B, C, H, W), dtype=jnp.float32)
    reconstructions = jax.random.uniform(k_rec, (B, C, H, W), dtype=jnp.float32)
    # capsule "classes" are vector lengths in [0, 1]
    classes = jax.nn.sigmoid(
        jax.random.normal(k_cls, (B, NUM_CLASSES))).astype(jnp.float32)
    labels = jax.nn.one_hot(
        jax.random.randint(k_lbl, (B,), 0, NUM_CLASSES), NUM_CLASSES
    ).astype(jnp.float32)

    loss = capsule_loss(images, labels, classes, reconstructions)
    jax.block_until_ready(loss)

    ref = _reference_loss(images, labels, classes, reconstructions)
    assert jnp.allclose(loss, ref, rtol=1e-5, atol=1e-5), (loss, ref)

    print("KERNEL_OK")
</pallas_src>

<mosaic_0001>
module attributes {stable_mosaic.version = 11 : i64} {
  func.func @_capsule_loss_kernel(%arg0: i32, %arg1: memref<2x10xf32, #tpu.memory_space<vmem>>, %arg2: memref<2x10xf32, #tpu.memory_space<vmem>>, %arg3: memref<16x128xf32, #tpu.memory_space<vmem>>, %arg4: memref<16x128xf32, #tpu.memory_space<vmem>>, %arg5: memref<1x1x128xf32, #tpu.memory_space<vmem>>) attributes {dimension_semantics = [#tpu.dimension_semantics<parallel>], iteration_bounds = array<i64: 1>, scalar_prefetch = 0 : i64, scratch_operands = 0 : i64, tpu.core_type = #tpu.core_type<tc>, window_params = [{pipeline_mode = #tpu.pipeline_mode<synchronous>, transform_indices = @transform_0, window_bounds = array<i64: 2, 10>}, {pipeline_mode = #tpu.pipeline_mode<synchronous>, transform_indices = @transform_1, window_bounds = array<i64: 2, 10>}, {transform_indices = @transform_2, window_bounds = array<i64: 16, 128>}, {transform_indices = @transform_3, window_bounds = array<i64: 16, 128>}, {transform_indices = @transform_4, window_bounds = array<i64: 1, 1, 128>}]} {
    %c0 = arith.constant 0 : index
    %c0_0 = arith.constant 0 : index
    %0 = vector.load %arg4[%c0, %c0_0] : memref<16x128xf32, #tpu.memory_space<vmem>>, vector<16x128xf32>
    %c0_1 = arith.constant 0 : index
    %c0_2 = arith.constant 0 : index
    %1 = vector.load %arg3[%c0_1, %c0_2] : memref<16x128xf32, #tpu.memory_space<vmem>>, vector<16x128xf32>
    %2 = arith.subf %0, %1 : vector<16x128xf32>
    %3 = arith.mulf %2, %2 : vector<16x128xf32>
    %cst = arith.constant dense<0.000000e+00> : vector<128xf32>
    %4 = vector.multi_reduction <add>, %3, %cst [0] : vector<16x128xf32> to vector<128xf32>
    %5 = vector.shape_cast %4 : vector<128xf32> to vector<1x128xf32>
    %cst_3 = arith.constant 2.500000e-04 : f32
    %6 = vector.broadcast %cst_3 : f32 to vector<1x128xf32>
    %7 = arith.mulf %5, %6 : vector<1x128xf32>
    %c0_4 = arith.constant 0 : index
    %c0_5 = arith.constant 0 : index
    %c0_6 = arith.constant 0 : index
    %8 = vector.load %arg5[%c0_4, %c0_5, %c0_6] : memref<1x1x128xf32, #tpu.memory_space<vmem>>, vector<1x1x128xf32>
    %9 = vector.shape_cast %8 : vector<1x1x128xf32> to vector<1x128xf32>
    %10 = vector.shape_cast %7 : vector<1x128xf32> to vector<1x1x128xf32>
    tpu.vector_store %arg5[%c0_4, %c0_5, %c0_6], %10 {strides = array<i32>} : memref<1x1x128xf32, #tpu.memory_space<vmem>>, vector<1x1x128xf32>,
    %c0_i32 = arith.constant 0 : i32
    %11 = arith.cmpi eq, %arg0, %c0_i32 : i32
    %12 = arith.extui %11 : i1 to i32
    %c0_i32_7 = arith.constant 0 : i32
    %13 = arith.cmpi ne, %12, %c0_i32_7 : i32
    scf.if %13 {
      %c0_8 = arith.constant 0 : index
      %c0_9 = arith.constant 0 : index
      %14 = vector.load %arg2[%c0_8, %c0_9] : memref<2x10xf32, #tpu.memory_space<vmem>>, vector<2x10xf32>
      %c0_10 = arith.constant 0 : index
      %c0_11 = arith.constant 0 : index
      %15 = vector.load %arg1[%c0_10, %c0_11] : memref<2x10xf32, #tpu.memory_space<vmem>>, vector<2x10xf32>
      %cst_12 = arith.constant 0.899999976 : f32
      %16 = vector.broadcast %cst_12 : f32 to vector<2x10xf32>
      %17 = arith.subf %16, %14 : vector<2x10xf32>
      %cst_13 = arith.constant 0.000000e+00 : f32
      %18 = vector.broadcast %cst_13 : f32 to vector<2x10xf32>
      %19 = arith.maximumf %17, %18 : vector<2x10xf32>
      %20 = arith.mulf %19, %19 : vector<2x10xf32>
      %cst_14 = arith.constant 1.000000e-01 : f32
      %21 = vector.broadcast %cst_14 : f32 to vector<2x10xf32>
      %22 = arith.subf %14, %21 : vector<2x10xf32>
      %cst_15 = arith.constant 0.000000e+00 : f32
      %23 = vector.broadcast %cst_15 : f32 to vector<2x10xf32>
      %24 = arith.maximumf %22, %23 : vector<2x10xf32>
      %25 = arith.mulf %24, %24 : vector<2x10xf32>
      %26 = arith.mulf %15, %20 : vector<2x10xf32>
      %cst_16 = arith.constant 1.000000e+00 : f32
      %27 = vector.broadcast %cst_16 : f32 to vector<2x10xf32>
      %28 = arith.subf %27, %15 : vector<2x10xf32>
      %cst_17 = arith.constant 5.000000e-01 : f32
      %29 = vector.broadcast %cst_17 : f32 to vector<2x10xf32>
      %30 = arith.mulf %29, %28 : vector<2x10xf32>
      %31 = arith.mulf %30, %25 : vector<2x10xf32>
      %32 = arith.addf %26, %31 : vector<2x10xf32>
      %33 = vector.shape_cast %32 : vector<2x10xf32> to vector<1x2x10xf32>
      %cst_18 = arith.constant dense<0.000000e+00> : vector<1xf32>
      %34 = vector.multi_reduction <add>, %33, %cst_18 [1, 2] : vector<1x2x10xf32> to vector<1xf32>
      %35 = vector.shape_cast %34 : vector<1xf32> to vector<1x1x1xf32>
      %36 = vector.extract %35[0, 0, 0] : f32 from vector<1x1x1xf32>
      %37 = tpu.iota {dimensions = array<i32: 1>} : vector<1x128xi32>
      %c0_19 = arith.constant 0 : index
      %c0_20 = arith.constant 0 : index
      %c0_21 = arith.constant 0 : index
      %38 = vector.load %arg5[%c0_19, %c0_20, %c0_21] : memref<1x1x128xf32, #tpu.memory_space<vmem>>, vector<1x1x128xf32>
      %39 = vector.shape_cast %38 : vector<1x1x128xf32> to vector<1x128xf32>
      %c0_i32_22 = arith.constant 0 : i32
      %40 = vector.broadcast %c0_i32_22 : i32 to vector<1x128xi32>
      %41 = arith.cmpi eq, %37, %40 : vector<1x128xi32>
      %cst_23 = arith.constant 5.000000e-01 : f32
      %42 = arith.mulf %36, %cst_23 : f32
      %cst_24 = arith.constant 0.000000e+00 : f32
      %43 = vector.broadcast %42 : f32 to vector<1x128xf32>
      %44 = vector.broadcast %cst_24 : f32 to vector<1x128xf32>
      %45 = arith.select %41, %43, %44 : vector<1x128xi1>, vector<1x128xf32>
      %46 = arith.addf %39, %45 : vector<1x128xf32>
      %c0_25 = arith.constant 0 : index
      %c0_26 = arith.constant 0 : index
      %c0_27 = arith.constant 0 : index
      %47 = vector.load %arg5[%c0_25, %c0_26, %c0_27] : memref<1x1x128xf32, #tpu.memory_space<vmem>>, vector<1x1x128xf32>
      %48 = vector.shape_cast %47 : vector<1x1x128xf32> to vector<1x128xf32>
      %49 = vector.shape_cast %46 : vector<1x128xf32> to vector<1x1x128xf32>
      tpu.vector_store %arg5[%c0_25, %c0_26, %c0_27], %49 {strides = array<i32>} : memref<1x1x128xf32, #tpu.memory_space<vmem>>, vector<1x1x128xf32>,
    } else {
    }
    return
  }
  func.func @transform_0(%arg0: i32) -> (i32, i32) {
    %c0_i32 = arith.constant 0 : i32
    %c0_i32_0 = arith.constant 0 : i32
    %c0_i32_1 = arith.constant 0 : i32
    return %c0_i32, %c0_i32_0 : i32, i32
  }
  func.func @transform_1(%arg0: i32) -> (i32, i32) {
    %c0_i32 = arith.constant 0 : i32
    %c0_i32_0 = arith.constant 0 : i32
    %c0_i32_1 = arith.constant 0 : i32
    return %c0_i32, %c0_i32_0 : i32, i32
  }
  func.func @transform_2(%arg0: i32) -> (i32, i32) {
    %c0_i32 = arith.constant 0 : i32
    %c0_i32_0 = arith.constant 0 : i32
    return %arg0, %c0_i32 : i32, i32
  }
  func.func @transform_3(%arg0: i32) -> (i32, i32) {
    %c0_i32 = arith.constant 0 : i32
    %c0_i32_0 = arith.constant 0 : i32
    return %arg0, %c0_i32 : i32, i32
  }
  func.func @transform_4(%arg0: i32) -> (i32, i32, i32) {
    %c0_i32 = arith.constant 0 : i32
    %c0_i32_0 = arith.constant 0 : i32
    %c0_i32_1 = arith.constant 0 : i32
    return %arg0, %c0_i32, %c0_i32_0 : i32, i32, i32
  }
}

</mosaic_0001>

<bundles_post_ra>
// kernel: tpu_custom_call.1
= control target key start
LH: loop header
LB: loop body
LE: loop exit
PB: predicated region body
PF: predicated region fallthrough
CT: control target
= control target key end

     0   :  { %9 = vsyncpa [#allocation3], 0  ;;  %s335_s0 = inlined_call_operand.hbm [shape: f32[2,10], index: 0, kind: input, shape index: {}]   ;;  %s336_s1 = inlined_call_operand.hbm [shape: f32[2,10], index: 1, kind: input, shape index: {}]   ;;  %s337_s2 = inlined_call_operand.hbm [shape: f32[16,128], index: 2, kind: input, shape index: {}]   ;;  %s338_s3 = inlined_call_operand.hbm [shape: f32[16,128], index: 3, kind: input, shape index: {}]   ;;  %s339_s4 = inlined_call_operand.hbm [shape: f32[1,1,128], index: 4, kind: output, shape index: {}]  }
   0x1   :  { %10 = vsyncpa [#allocation6], 0 }
   0x2   :  { %11 = vsyncpa [#allocation9], 0  ;;  %s29_s17 = sshll.u32 %s336_s1, 4  ;;  %s30_s17 = int_to_ptr.hbm [resolvable:$true] %s29_s17 }
   0x3   :  { %12 = vsyncpa [#allocation4], 0  ;;  %s288_s18 = smov [#allocation5]   ;;  %s18_s22 = sshll.u32 %s335_s0, 4  ;;  %s19_s22 = int_to_ptr.hbm [resolvable:$true] %s18_s22 }
   0x4   :  { %s31_s19 = sshll.u32 %s288_s18, 4  ;;  %s289_s23 = smov [#allocation2]   ;;  %s32_s19 = int_to_ptr.vmem [resolvable:$true] %s31_s19 }
   0x5   :  { %34 = dma.hbm_to_vmem [thread:$0]  %s30_s17, 32, %s32_s19, [#allocation6]  }
   0x6   :  { %s20_s24 = sshll.u32 %s289_s23, 4  ;;  %s39_s27 = sshll.u32 %s337_s2, 4  ;;  %s21_s24 = int_to_ptr.vmem [resolvable:$true] %s20_s24  ;;  %s40_s27 = int_to_ptr.hbm [resolvable:$true] %s39_s27 }
   0x7   :  { %23 = dma.hbm_to_vmem [thread:$0]  %s19_s22, 32, %s21_s24, [#allocation3]  }
   0x8   :  { %s290_s1 = smov [#allocation7]   ;;  %s52_s5 = sshll.u32 %s338_s3, 4  ;;  %s53_s5 = int_to_ptr.hbm [resolvable:$true] %s52_s5 }
   0x9   :  { %s41_s28 = sshll.u32 %s290_s1, 4  ;;  %s291_s6 = smov 128   ;;  %s42_s28 = int_to_ptr.vmem [resolvable:$true] %s41_s28 }
   0xa   :  { %s292_s0 = smov 8   ;;  %s293_s7 = smov [#allocation8]  }
   0xb   :  { %47 = dma.hbm_to_vmem [thread:$0]  %s40_s27, 256, %s42_s28, [#allocation6], %s291_s6, %s291_s6, %s292_s0  }
   0xc   :  { %s54_s8 = sshll.u32 %s293_s7, 4  ;;  %s55_s8 = int_to_ptr.vmem [resolvable:$true] %s54_s8 }
   0xd   :  { %60 = dma.hbm_to_vmem [thread:$0]  %s53_s5, 256, %s55_s8, [#allocation9], %s291_s6, %s291_s6, %s292_s0  }
   0xe   :  { %280 = dma.done.wait [#allocation3], 32  }
   0xf   :  { %281 = vsyncadd [#allocation3], 4294967264 }
  0x10   :  { %282 = dma.done.wait [#allocation6], 288  }
  0x11   :  { %283 = vsyncadd [#allocation6], 4294967008 }
  0x12   :  { %284 = dma.done.wait [#allocation9], 256  }
  0x13   :  { %285 = vsyncadd [#allocation9], 4294967040  ;;  %v77_v0 = vld [vmem:[#allocation8] sm:$0xff]  ;;  %v78_v1 = vld [vmem:[#allocation8 + $0x8] sm:$0xff]  ;;  %vm111_vm0 = vcmask 74752   ;;  %v122_v37 = vlaneseq  ;;  %s294_s9 = smov [#allocation10]  }
  0x14   :  { %v79_v2 = vld [vmem:[#allocation7] sm:$0xff]  ;;  %v80_v3 = vld [vmem:[#allocation7 + $0x8] sm:$0xff]  ;;  %v98_v5 = vld [vmem:[#allocation5] sm:$0x3]  ;;  %s136_s10 = sshll.u32 %s294_s9, 4  ;;  %s138_s13 = sshll.u32 %s339_s4, 4  ;;  %s137_s10 = int_to_ptr.vmem [resolvable:$true] %s136_s10  ;;  %s139_s13 = int_to_ptr.hbm [resolvable:$true] %s138_s13 }
  0x15   :  { %v81_v4 = vsub.f32 %v77_v0, %v79_v2  ;;  %v99_v6 = vld [vmem:[#allocation2] sm:$0x3]  ;;  %v82_v7 = vsub.f32 %v78_v1, %v80_v3  ;;  %v100_v8 = vsub.f32 0.9, %v98_v5  ;;  %v150_v9 = vadd.f32 -0.1, %v98_v5 }
  0x16   :  { %v107_v10 = vsub.f32 1.0, %v99_v6  ;;  %v123_v38 = vand.u32 127, %v122_v37 }
  0x17   :  { %v83_v11 = vmul.f32 %v81_v4, %v81_v4  ;;  %v84_v12 = vmul.f32 %v82_v7, %v82_v7  ;;  %v101_v13 = vmax.f32 %v100_v8, 0.0  ;;  %v104_v14 = vmax.f32 %v150_v9, 0.0 }
  0x18   :  { %v108_v15 = vmul.f32 0.5, %v107_v10  ;;  %vm125_vm1 = vcmp.eq.s32.totalorder %v123_v38, 0 }
  0x19   :  { %v85_v16 = vadd.f32 %v84_v12, %v83_v11  ;;  %v102_v17 = vmul.f32 %v101_v13, %v101_v13  ;;  %v105_v18 = vmul.f32 %v104_v14, %v104_v14 }
  0x1b   :  { %v86_v19 = vrot.slane %v85_v16, 4  ;;  %v106_v20 = vmul.f32 %v102_v17, %v99_v6  ;;  %v109_v21 = vmul.f32 %v108_v15, %v105_v18 }
  0x1d   :  { %v87_v22 = vadd.f32 %v86_v19, %v85_v16  ;;  %v110_v23 = vadd.f32 %v109_v21, %v106_v20 }
  0x1f   :  { %v88_v24 = vrot.slane %v87_v22, 2  ;;  %v112_v25 = vsel %vm111_vm0, %v110_v23, 0.0 }
  0x20   :  { %113 = vadd.xlane.f32.xlu0 %v112_v25 }
  0x21   :  { %v89_v26 = vadd.f32 %v88_v24, %v87_v22 }
  0x23   :  { %v90_v27 = vrot.slane %v89_v26, 1 }
  0x25   :  { %v91_v28 = vadd.f32 %v90_v27, %v89_v26 }
  0x27   :  { %v92_v29 = vmul.f32 0.00025, %v91_v28 }
  0x29   :  { %93 = vst [vmem:[#allocation10] sm:$0x1] %v92_v29 }
  0x30   :  { %v124_v39 = vld [vmem:[#allocation10] sm:$0x1] }
  0x93   :  { %v114_v30 = vpop.xlane.xlu0 %113 }
  0x94   :  { %v115_v31 = vrot.slane %v114_v30, 4 }
  0x96   :  { %v116_v32 = vadd.f32 %v115_v31, %v114_v30 }
  0x98   :  { %v117_v33 = vrot.slane %v116_v32, 2 }
  0x9a   :  { %v118_v34 = vadd.f32 %v117_v33, %v116_v32 }
  0x9c   :  { %v119_v35 = vrot.slane %v118_v34, 1 }
  0x9e   :  { %v120_v36 = vadd.f32 %v119_v35, %v118_v34 }
  0xa0   :  { %151 = vpush %v120_v36 }
  0xd1   :  { %s152_s2 = spop %151 }
  0xd2   :  { %s126_s3 = smul.f32 0.5, %s152_s2 }
  0xd4   :  { %v127_v40 = vstv %s126_s3 }
  0xd5   :  { %v128_v41 = vsel %vm125_vm1, %v127_v40, 0.0 }
  0xd6   :  { %v129_v42 = vadd.f32 %v128_v41, %v124_v39 }
  0xd8   :  { %130 = vst [vmem:[#allocation10] sm:$0x1] %v129_v42 }
  0xd9   :  { %141 = dma.vmem_to_hbm [thread:$0]  %s137_s10, 16, %s139_s13, [#allocation4]  }
  0xda   :  { %286 = dma.done.wait [#allocation4], 16  }
  0xdb   :  { %287 = vsyncadd [#allocation4], 4294967280 }
  0xdc   :  { %146 = vsyncpa [#allocation3], 1 }
  0xdd   :  { %147 = vsyncpa [#allocation6], 1 }
  0xde   :  { %148 = vsyncpa [#allocation9], 1 }
  0xdf   :  { %149 = vsyncpa [#allocation4], 1 }

</bundles_post_ra>
